<compile_context>
chip_gen: v6e
topology: v6e:2x2x1
jax: 0.10.0
libtpu: 0.0.40
codegen_flags: <defaults>
</compile_context>

<pallas_src>
import functools

import numpy as np
import jax
import jax.numpy as jnp
from jax import lax
from jax.experimental import pallas as pl
from jax.experimental.pallas import tpu as pltpu


# ----------------------------------------------------------------------------
# Pallas kernel (one grid step = SPB samples, channels in sublanes, HW in lanes)
# ----------------------------------------------------------------------------
def causal_lstm_kernel(p_ref, cm_ref, w_ref, b_ref, wo_ref, bo_ref,
                       gamma_ref, beta_ref, out_ref,
                       *, num_hidden, hw, spb, eps):
    NH = num_hidden

    # One fused MXU matmul: (7NH, KKC) @ (KKC, spb*hw) -> (7NH, spb*hw), f32 acc.
    gates = jnp.dot(w_ref[...], p_ref[...],
                    preferred_element_type=jnp.float32) + b_ref[...]

    # Gate row order: [i, i_m, f, f_m, g, g_m, o]; forget bias already folded
    # into the f / f_m rows of the bias.  All slices below are sublane slices.
    sig = jax.nn.sigmoid(gates[:4 * NH, :])        # [i, i_m, f, f_m]
    tnh = jnp.tanh(gates[4 * NH:6 * NH, :])        # [g, g_m]
    o_pre = gates[6 * NH:, :]                      # (NH, L)

    cm_old = cm_ref[...]                           # (2NH, L) packed [c | m]
    delta = sig[:2 * NH, :] * tnh                  # [delta_c | delta_m]
    cm_new = sig[2 * NH:, :] * cm_old + delta      # [c_new  | m_new ]

    # 1x1 conv_o as a matmul on the packed [c_new | m_new] slab (no concat).
    o_conv = jnp.dot(wo_ref[...], cm_new.astype(wo_ref.dtype),
                     preferred_element_type=jnp.float32) + bo_ref[...]
    o_gate = jax.nn.sigmoid(o_pre + o_conv)        # (NH, L)

    c_new = cm_new[:NH, :]
    m_new = cm_new[NH:, :]
    s = c_new + m_new

    # LayerNorm over all C*H*W elements of each sample (two-pass statistics).
    inv_n = 1.0 / float(hw * NH)
    parts = []
    for p in range(spb):                           # static, spb is tiny (1 or 2)
        sp = s[:, p * hw:(p + 1) * hw]
        mu = jnp.sum(sp) * inv_n
        d = sp - mu
        var = jnp.sum(d * d) * inv_n
        parts.append(d * lax.rsqrt(var + eps) * gamma_ref[...] + beta_ref[...])
    s_ln = parts[0] if spb == 1 else jnp.concatenate(parts, axis=1)

    h_new = o_gate * jnp.tanh(s_ln)

    # Single packed, lane-dense output slab: rows = [h, c, m, delta_c, delta_m].
    out_ref[...] = jnp.concatenate(
        [h_new, c_new, m_new, delta[:NH, :], delta[NH:, :]], axis=0)


# ----------------------------------------------------------------------------
# Weight fusion (hoist this out of the per-timestep path in a rollout)
# ----------------------------------------------------------------------------
def fuse_params(params, *, num_hidden, forget_bias=1.0,
                compute_dtype=jnp.bfloat16):
    wx, bx, wh, bh, wm, bm, wo, bo, gamma, beta = params
    K, _, Cin, _ = wx.shape
    NH = num_hidden
    C_all = Cin + 2 * NH
    KKC = K * K * C_all
    H, W, _ = gamma.shape

    def blk(a, j):
        return a[..., j * NH:(j + 1) * NH]

    # Combined output row order (after transpose): [i, i_m, f, f_m, g, g_m, o].
    w_all = jnp.zeros((K, K, C_all, 7 * NH), jnp.float32)
    xs, hs, ms = slice(0, Cin), slice(Cin, Cin + NH), slice(Cin + NH, C_all)
    # x rows: wx blocks are [i_x, f_x, g_x, i_m, f_m, g_m, o_x]
    w_all = w_all.at[:, :, xs, 0 * NH:1 * NH].set(blk(wx, 0))   # i_x
    w_all = w_all.at[:, :, xs, 1 * NH:2 * NH].set(blk(wx, 3))   # i_m
    w_all = w_all.at[:, :, xs, 2 * NH:3 * NH].set(blk(wx, 1))   # f_x
    w_all = w_all.at[:, :, xs, 3 * NH:4 * NH].set(blk(wx, 4))   # f_m
    w_all = w_all.at[:, :, xs, 4 * NH:5 * NH].set(blk(wx, 2))   # g_x
    w_all = w_all.at[:, :, xs, 5 * NH:6 * NH].set(blk(wx, 5))   # g_m
    w_all = w_all.at[:, :, xs, 6 * NH:7 * NH].set(blk(wx, 6))   # o_x
    # h rows: wh blocks are [i_h, f_h, g_h, o_h]
    w_all = w_all.at[:, :, hs, 0 * NH:1 * NH].set(blk(wh, 0))
    w_all = w_all.at[:, :, hs, 2 * NH:3 * NH].set(blk(wh, 1))
    w_all = w_all.at[:, :, hs, 4 * NH:5 * NH].set(blk(wh, 2))
    w_all = w_all.at[:, :, hs, 6 * NH:7 * NH].set(blk(wh, 3))
    # m rows: wm blocks are [i_mh, f_mh, g_mh]
    w_all = w_all.at[:, :, ms, 1 * NH:2 * NH].set(blk(wm, 0))
    w_all = w_all.at[:, :, ms, 3 * NH:4 * NH].set(blk(wm, 1))
    w_all = w_all.at[:, :, ms, 5 * NH:6 * NH].set(blk(wm, 2))
    w_t = w_all.reshape(KKC, 7 * NH).T.astype(compute_dtype)    # (7NH, KKC)

    bb = lambda a, j: a[j * NH:(j + 1) * NH]
    b_all = jnp.concatenate([
        bb(bx, 0) + bb(bh, 0),                 # i
        bb(bx, 3) + bb(bm, 0),                 # i_m
        bb(bx, 1) + bb(bh, 1) + forget_bias,   # f   (+forget bias)
        bb(bx, 4) + bb(bm, 1) + forget_bias,   # f_m (+forget bias)
        bb(bx, 2) + bb(bh, 2),                 # g
        bb(bx, 5) + bb(bm, 2),                 # g_m
        bb(bx, 6) + bb(bh, 3),                 # o
    ]).reshape(7 * NH, 1).astype(jnp.float32)

    wo_t = wo.T.astype(compute_dtype)                            # (NH, 2NH)
    bo_k = bo.reshape(NH, 1).astype(jnp.float32)
    gamma_t = jnp.transpose(gamma, (2, 0, 1)).reshape(NH, H * W)
    beta_t = jnp.transpose(beta, (2, 0, 1)).reshape(NH, H * W)
    return (w_t, b_all, wo_t, bo_k, gamma_t, beta_t)


def _default_num_blocks(n):
    """One grid step on single-TC chips (v5e/v6e); 2-way batch split on v7x."""
    try:
        kind = jax.devices()[0].device_kind.lower()
    except Exception:
        kind = ""
    if n % 2 == 0 and "v7" in kind:
        return 2
    return 1


# ----------------------------------------------------------------------------
# Wrapper: im2col, transposed lane-dense layouts, pallas_call
# ----------------------------------------------------------------------------
def causal_lstm_cell(x, h, c, m, fused, *, num_hidden, filter_size,
                     num_blocks=None, eps=1e-5, compute_dtype=jnp.bfloat16):
    """x: (N,H,W,Cin), h/c/m: (N,H,W,NH), float32 NHWC.

    Returns (h_new, c_new, m_new, delta_c, delta_m), each (N,H,W,NH) float32.
    """
    w_t, b_all, wo_t, bo_k, gamma_t, beta_t = fused
    N, H, W, Cin = x.shape
    NH = num_hidden
    K = filter_size
    pad = K // 2
    C_all = Cin + 2 * NH
    KKC = K * K * C_all
    HW = H * W

    if num_blocks is None:
        num_blocks = _default_num_blocks(N)
    NB = num_blocks
    assert N % NB == 0, "batch must divide the grid size"
    SPB = N // NB            # samples per grid step
    L = SPB * HW             # lanes per block (multiple of 128 for W=16)

    # im2col on [x|h|m], transposed so KKC is the contraction (sublane) axis
    # and (n, h, w) packs the lanes.
    xhm = jnp.concatenate([x, h, m], axis=-1)                     # (N,H,W,C_all)
    xhm_p = jnp.pad(xhm, ((0, 0), (pad, pad), (pad, pad), (0, 0)))
    taps = [xhm_p[:, kh:kh + H, kw:kw + W, :]
            for kh in range(K) for kw in range(K)]
    patches = jnp.stack(taps, axis=3).reshape(N, HW, KKC)
    patches_t = jnp.transpose(patches, (2, 0, 1)).reshape(KKC, N * HW)
    patches_t = patches_t.astype(compute_dtype)
    # TODO(synk): for large HW or recurrent rollouts, skip the HBM im2col and
    # assemble the patch slab in-kernel from the padded (H+2,W+2,C_all) tile.

    # Packed state [c | m]: channels in sublanes, (n,h,w) in lanes, f32.
    c_t = jnp.transpose(c, (3, 0, 1, 2)).reshape(NH, N * HW)
    m_t = jnp.transpose(m, (3, 0, 1, 2)).reshape(NH, N * HW)
    cm_in = jnp.concatenate([c_t, m_t], axis=0)                   # (2NH, N*HW)

    kernel = functools.partial(causal_lstm_kernel,
                               num_hidden=NH, hw=HW, spb=SPB, eps=eps)

    batched = lambda rows: pl.BlockSpec((rows, L), lambda b: (0, b))
    const = lambda shape: pl.BlockSpec(shape, lambda b: (0,) * len(shape))

    out = pl.pallas_call(
        kernel,
        out_shape=jax.ShapeDtypeStruct((5 * NH, N * HW), jnp.float32),
        grid=(NB,),
        in_specs=[
            batched(KKC),            # patches (bf16)
            batched(2 * NH),         # packed [c | m] (f32)
            const((7 * NH, KKC)),    # fused gate weight (bf16)
            const((7 * NH, 1)),      # fused gate bias (incl. forget bias)
            const((NH, 2 * NH)),     # conv_o weight (1x1 as matmul, bf16)
            const((NH, 1)),          # conv_o bias
            const((NH, HW)),         # gamma
            const((NH, HW)),         # beta
        ],
        out_specs=batched(5 * NH),   # single packed output slab
        compiler_params=pltpu.CompilerParams(
            dimension_semantics=("parallel",)),  # 2-TC split on v7x; no-op v5e/v6e
    )(patches_t, cm_in, w_t, b_all, wo_t, bo_k, gamma_t, beta_t)

    # (5*NH, N*HW) -> five (N, H, W, NH) arrays.
    out5 = jnp.transpose(out.reshape(5, NH, N, H, W), (0, 2, 3, 4, 1))
    return tuple(out5[i] for i in range(5))


# ----------------------------------------------------------------------------
# Pure-JAX reference (mirrors the PyTorch forward, in NHWC, f32 everywhere)
# ----------------------------------------------------------------------------
def causal_lstm_ref(x, h, c, m, params, *, num_hidden, filter_size,
                    forget_bias=1.0, eps=1e-5):
    wx, bx, wh, bh, wm, bm, wo, bo, gamma, beta = params
    NH = num_hidden
    pad = filter_size // 2
    dn = ("NHWC", "HWIO", "NHWC")

    def conv(a, w, b):
        out = lax.conv_general_dilated(
            a, w, (1, 1), [(pad, pad), (pad, pad)], dimension_numbers=dn,
            precision=lax.Precision.HIGHEST)
        return out + b.reshape(1, 1, 1, -1)

    x_cat = conv(x, wx, bx)
    h_cat = conv(h, wh, bh)
    m_cat = conv(m, wm, bm)

    split = lambda a, n: [a[..., k * NH:(k + 1) * NH] for k in range(n)]
    i_x, f_x, g_x, i_m, f_m, g_m, o_x = split(x_cat, 7)
    i_h, f_h, g_h, o_h = split(h_cat, 4)
    i_mh, f_mh, g_mh = split(m_cat, 3)

    i_g = jax.nn.sigmoid(i_x + i_h)
    f_g = jax.nn.sigmoid(f_x + f_h + forget_bias)
    g_g = jnp.tanh(g_x + g_h)
    delta_c = i_g * g_g
    c_new = f_g * c + delta_c

    i_mc = jax.nn.sigmoid(i_m + i_mh)
    f_mc = jax.nn.sigmoid(f_m + f_mh + forget_bias)
    g_mc = jnp.tanh(g_m + g_mh)
    delta_m = i_mc * g_mc
    m_new = f_mc * m + delta_m

    mem = jnp.concatenate([c_new, m_new], axis=-1)
    o_conv = jnp.einsum("nhwc,co->nhwo", mem, wo,
                        precision=lax.Precision.HIGHEST) + bo.reshape(1, 1, 1, -1)
    o_g = jax.nn.sigmoid(o_x + o_h + o_conv)

    s = c_new + m_new
    mu = jnp.mean(s, axis=(1, 2, 3), keepdims=True)
    var = jnp.mean((s - mu) ** 2, axis=(1, 2, 3), keepdims=True)
    s_ln = (s - mu) * lax.rsqrt(var + eps) * gamma[None] + beta[None]
    h_new = o_g * jnp.tanh(s_ln)
    return h_new, c_new, m_new, delta_c, delta_m


# ----------------------------------------------------------------------------
# Main
# ----------------------------------------------------------------------------
if __name__ == "__main__":
    # Module config: CausalLSTMCell(in_channel=4, num_hidden=8, width=16,
    #                               filter_size=3, stride=1, layer_norm=True)
    # PyTorch is NCHW (x = [2,4,16,16]); this script works in NHWC.
    N, Cin, NH, Wd, K = 2, 4, 8, 16, 3
    H = W = Wd

    key = jax.random.PRNGKey(0)
    ks = jax.random.split(key, 16)

    wx = 0.1 * jax.random.normal(ks[0], (K, K, Cin, 7 * NH), jnp.float32)
    bx = 0.1 * jax.random.normal(ks[1], (7 * NH,), jnp.float32)
    wh = 0.1 * jax.random.normal(ks[2], (K, K, NH, 4 * NH), jnp.float32)
    bh = 0.1 * jax.random.normal(ks[3], (4 * NH,), jnp.float32)
    wm = 0.1 * jax.random.normal(ks[4], (K, K, NH, 3 * NH), jnp.float32)
    bm = 0.1 * jax.random.normal(ks[5], (3 * NH,), jnp.float32)
    wo = 0.1 * jax.random.normal(ks[6], (2 * NH, NH), jnp.float32)   # 1x1 conv
    bo = 0.1 * jax.random.normal(ks[7], (NH,), jnp.float32)
    gamma = 1.0 + 0.1 * jax.random.normal(ks[8], (H, W, NH), jnp.float32)
    beta = 0.1 * jax.random.normal(ks[9], (H, W, NH), jnp.float32)
    params = (wx, bx, wh, bh, wm, bm, wo, bo, gamma, beta)

    x = 0.5 * jax.random.normal(ks[10], (N, H, W, Cin), jnp.float32)
    h = 0.5 * jax.random.normal(ks[11], (N, H, W, NH), jnp.float32)
    c = 0.5 * jax.random.normal(ks[12], (N, H, W, NH), jnp.float32)
    m = 0.5 * jax.random.normal(ks[13], (N, H, W, NH), jnp.float32)

    # Weight fusion is done once (hoistable out of a recurrent rollout).
    fused = fuse_params(params, num_hidden=NH, forget_bias=1.0)

    outs = causal_lstm_cell(x, h, c, m, fused, num_hidden=NH, filter_size=K)
    outs = jax.block_until_ready(outs)

    refs = causal_lstm_ref(x, h, c, m, params, num_hidden=NH, filter_size=K)
    refs = jax.block_until_ready(refs)

    # Tolerance sized for bf16-fed MXU matmuls vs. the f32 HIGHEST reference.
    names = ("h_new", "c_new", "m_new", "delta_c", "delta_m")
    for name, a, b in zip(names, outs, refs):
        np.testing.assert_allclose(np.asarray(a), np.asarray(b),
                                   rtol=2e-2, atol=2e-2, err_msg=name)

    print("KERNEL_OK")
</pallas_src>

<mosaic_0001>
module attributes {stable_mosaic.version = 11 : i64} {
  func.func @causal_lstm_kernel(%arg0: i32, %arg1: memref<180x512xbf16, #tpu.memory_space<vmem>>, %arg2: memref<16x512xf32, #tpu.memory_space<vmem>>, %arg3: memref<56x180xbf16, #tpu.memory_space<vmem>>, %arg4: memref<56x1xf32, #tpu.memory_space<vmem>>, %arg5: memref<8x16xbf16, #tpu.memory_space<vmem>>, %arg6: memref<8x1xf32, #tpu.memory_space<vmem>>, %arg7: memref<8x256xf32, #tpu.memory_space<vmem>>, %arg8: memref<8x256xf32, #tpu.memory_space<vmem>>, %arg9: memref<40x512xf32, #tpu.memory_space<vmem>>) attributes {dimension_semantics = [#tpu.dimension_semantics<parallel>], iteration_bounds = array<i64: 1>, scalar_prefetch = 0 : i64, scratch_operands = 0 : i64, tpu.core_type = #tpu.core_type<tc>, window_params = [{transform_indices = @transform_0, window_bounds = array<i64: 180, 512>}, {transform_indices = @transform_1, window_bounds = array<i64: 16, 512>}, {pipeline_mode = #tpu.pipeline_mode<synchronous>, transform_indices = @transform_2, window_bounds = array<i64: 56, 180>}, {pipeline_mode = #tpu.pipeline_mode<synchronous>, transform_indices = @transform_3, window_bounds = array<i64: 56, 1>}, {pipeline_mode = #tpu.pipeline_mode<synchronous>, transform_indices = @transform_4, window_bounds = array<i64: 8, 16>}, {pipeline_mode = #tpu.pipeline_mode<synchronous>, transform_indices = @transform_5, window_bounds = array<i64: 8, 1>}, {pipeline_mode = #tpu.pipeline_mode<synchronous>, transform_indices = @transform_6, window_bounds = array<i64: 8, 256>}, {pipeline_mode = #tpu.pipeline_mode<synchronous>, transform_indices = @transform_7, window_bounds = array<i64: 8, 256>}, {transform_indices = @transform_8, window_bounds = array<i64: 40, 512>}]} {
    %c0 = arith.constant 0 : index
    %c0_0 = arith.constant 0 : index
    %0 = vector.load %arg3[%c0, %c0_0] : memref<56x180xbf16, #tpu.memory_space<vmem>>, vector<56x180xbf16>
    %c0_1 = arith.constant 0 : index
    %c0_2 = arith.constant 0 : index
    %1 = vector.load %arg1[%c0_1, %c0_2] : memref<180x512xbf16, #tpu.memory_space<vmem>>, vector<180x512xbf16>
    %cst = arith.constant dense<0.000000e+00> : vector<56x512xf32>
    %2 = tpu.matmul %0, %1, %cst {dimension_numbers = #tpu.dot_dimension_numbers<[1], [0], [0], [1], [0, 0, 1, 1], [], []>} : vector<56x180xbf16>, vector<180x512xbf16>, vector<56x512xf32> -> vector<56x512xf32>
    %c0_3 = arith.constant 0 : index
    %c0_4 = arith.constant 0 : index
    %3 = vector.load %arg4[%c0_3, %c0_4] : memref<56x1xf32, #tpu.memory_space<vmem>>, vector<56x1xf32>
    %4 = vector.broadcast %3 : vector<56x1xf32> to vector<56x512xf32>
    %5 = arith.addf %2, %4 : vector<56x512xf32>
    %6 = vector.extract_strided_slice %5 {offsets = [0, 0], sizes = [32, 512], strides = [1, 1]} : vector<56x512xf32> to vector<32x512xf32>
    %7 = arith.negf %6 : vector<32x512xf32>
    %8 = math.exp %7 : vector<32x512xf32>
    %cst_5 = arith.constant 1.000000e+00 : f32
    %9 = vector.broadcast %cst_5 : f32 to vector<32x512xf32>
    %10 = arith.addf %9, %8 : vector<32x512xf32>
    %11 = arith.divf %9, %10 : vector<32x512xf32>
    %12 = vector.extract_strided_slice %5 {offsets = [32, 0], sizes = [16, 512], strides = [1, 1]} : vector<56x512xf32> to vector<16x512xf32>
    %13 = math.tanh %12 : vector<16x512xf32>
    %14 = vector.extract_strided_slice %5 {offsets = [48, 0], sizes = [8, 512], strides = [1, 1]} : vector<56x512xf32> to vector<8x512xf32>
    %c0_6 = arith.constant 0 : index
    %c0_7 = arith.constant 0 : index
    %15 = vector.load %arg2[%c0_6, %c0_7] : memref<16x512xf32, #tpu.memory_space<vmem>>, vector<16x512xf32>
    %16 = vector.extract_strided_slice %11 {offsets = [0, 0], sizes = [16, 512], strides = [1, 1]} : vector<32x512xf32> to vector<16x512xf32>
    %17 = arith.mulf %16, %13 : vector<16x512xf32>
    %18 = vector.extract_strided_slice %11 {offsets = [16, 0], sizes = [16, 512], strides = [1, 1]} : vector<32x512xf32> to vector<16x512xf32>
    %19 = arith.mulf %18, %15 : vector<16x512xf32>
    %20 = arith.addf %19, %17 : vector<16x512xf32>
    %c0_8 = arith.constant 0 : index
    %c0_9 = arith.constant 0 : index
    %21 = vector.load %arg5[%c0_8, %c0_9] : memref<8x16xbf16, #tpu.memory_space<vmem>>, vector<8x16xbf16>
    %22 = arith.truncf %20 : vector<16x512xf32> to vector<16x512xbf16>
    %cst_10 = arith.constant dense<0.000000e+00> : vector<8x512xf32>
    %23 = tpu.matmul %21, %22, %cst_10 {dimension_numbers = #tpu.dot_dimension_numbers<[1], [0], [0], [1], [0, 0, 1, 1], [], []>} : vector<8x16xbf16>, vector<16x512xbf16>, vector<8x512xf32> -> vector<8x512xf32>
    %c0_11 = arith.constant 0 : index
    %c0_12 = arith.constant 0 : index
    %24 = vector.load %arg6[%c0_11, %c0_12] : memref<8x1xf32, #tpu.memory_space<vmem>>, vector<8x1xf32>
    %25 = vector.broadcast %24 : vector<8x1xf32> to vector<8x512xf32>
    %26 = arith.addf %23, %25 : vector<8x512xf32>
    %27 = arith.addf %14, %26 : vector<8x512xf32>
    %28 = arith.negf %27 : vector<8x512xf32>
    %29 = math.exp %28 : vector<8x512xf32>
    %cst_13 = arith.constant 1.000000e+00 : f32
    %30 = vector.broadcast %cst_13 : f32 to vector<8x512xf32>
    %31 = arith.addf %30, %29 : vector<8x512xf32>
    %32 = arith.divf %30, %31 : vector<8x512xf32>
    %33 = vector.extract_strided_slice %20 {offsets = [0, 0], sizes = [8, 512], strides = [1, 1]} : vector<16x512xf32> to vector<8x512xf32>
    %34 = vector.extract_strided_slice %20 {offsets = [8, 0], sizes = [8, 512], strides = [1, 1]} : vector<16x512xf32> to vector<8x512xf32>
    %35 = arith.addf %33, %34 : vector<8x512xf32>
    %36 = vector.extract_strided_slice %35 {offsets = [0, 0], sizes = [8, 256], strides = [1, 1]} : vector<8x512xf32> to vector<8x256xf32>
    %37 = vector.shape_cast %36 : vector<8x256xf32> to vector<1x8x256xf32>
    %cst_14 = arith.constant dense<0.000000e+00> : vector<1xf32>
    %38 = vector.multi_reduction <add>, %37, %cst_14 [1, 2] : vector<1x8x256xf32> to vector<1xf32>
    %39 = vector.shape_cast %38 : vector<1xf32> to vector<1x1x1xf32>
    %40 = vector.extract %39[0, 0, 0] : f32 from vector<1x1x1xf32>
    %cst_15 = arith.constant 4.8828125E-4 : f32
    %41 = arith.mulf %40, %cst_15 : f32
    %42 = vector.broadcast %41 : f32 to vector<8x256xf32>
    %43 = arith.subf %36, %42 : vector<8x256xf32>
    %44 = arith.mulf %43, %43 : vector<8x256xf32>
    %45 = vector.shape_cast %44 : vector<8x256xf32> to vector<1x8x256xf32>
    %cst_16 = arith.constant dense<0.000000e+00> : vector<1xf32>
    %46 = vector.multi_reduction <add>, %45, %cst_16 [1, 2] : vector<1x8x256xf32> to vector<1xf32>
    %47 = vector.shape_cast %46 : vector<1xf32> to vector<1x1x1xf32>
    %48 = vector.extract %47[0, 0, 0] : f32 from vector<1x1x1xf32>
    %cst_17 = arith.constant 4.8828125E-4 : f32
    %49 = arith.mulf %48, %cst_17 : f32
    %cst_18 = arith.constant 9.99999974E-6 : f32
    %50 = arith.addf %49, %cst_18 : f32
    %51 = math.rsqrt %50 : f32
    %52 = vector.broadcast %51 : f32 to vector<8x256xf32>
    %53 = arith.mulf %43, %52 : vector<8x256xf32>
    %c0_19 = arith.constant 0 : index
    %c0_20 = arith.constant 0 : index
    %54 = vector.load %arg7[%c0_19, %c0_20] : memref<8x256xf32, #tpu.memory_space<vmem>>, vector<8x256xf32>
    %55 = arith.mulf %53, %54 : vector<8x256xf32>
    %c0_21 = arith.constant 0 : index
    %c0_22 = arith.constant 0 : index
    %56 = vector.load %arg8[%c0_21, %c0_22] : memref<8x256xf32, #tpu.memory_space<vmem>>, vector<8x256xf32>
    %57 = arith.addf %55, %56 : vector<8x256xf32>
    %58 = vector.extract_strided_slice %35 {offsets = [0, 256], sizes = [8, 256], strides = [1, 1]} : vector<8x512xf32> to vector<8x256xf32>
    %59 = vector.shape_cast %58 : vector<8x256xf32> to vector<1x8x256xf32>
    %cst_23 = arith.constant dense<0.000000e+00> : vector<1xf32>
    %60 = vector.multi_reduction <add>, %59, %cst_23 [1, 2] : vector<1x8x256xf32> to vector<1xf32>
    %61 = vector.shape_cast %60 : vector<1xf32> to vector<1x1x1xf32>
    %62 = vector.extract %61[0, 0, 0] : f32 from vector<1x1x1xf32>
    %cst_24 = arith.constant 4.8828125E-4 : f32
    %63 = arith.mulf %62, %cst_24 : f32
    %64 = vector.broadcast %63 : f32 to vector<8x256xf32>
    %65 = arith.subf %58, %64 : vector<8x256xf32>
    %66 = arith.mulf %65, %65 : vector<8x256xf32>
    %67 = vector.shape_cast %66 : vector<8x256xf32> to vector<1x8x256xf32>
    %cst_25 = arith.constant dense<0.000000e+00> : vector<1xf32>
    %68 = vector.multi_reduction <add>, %67, %cst_25 [1, 2] : vector<1x8x256xf32> to vector<1xf32>
    %69 = vector.shape_cast %68 : vector<1xf32> to vector<1x1x1xf32>
    %70 = vector.extract %69[0, 0, 0] : f32 from vector<1x1x1xf32>
    %cst_26 = arith.constant 4.8828125E-4 : f32
    %71 = arith.mulf %70, %cst_26 : f32
    %cst_27 = arith.constant 9.99999974E-6 : f32
    %72 = arith.addf %71, %cst_27 : f32
    %73 = math.rsqrt %72 : f32
    %74 = vector.broadcast %73 : f32 to vector<8x256xf32>
    %75 = arith.mulf %65, %74 : vector<8x256xf32>
    %c0_28 = arith.constant 0 : index
    %c0_29 = arith.constant 0 : index
    %76 = vector.load %arg7[%c0_28, %c0_29] : memref<8x256xf32, #tpu.memory_space<vmem>>, vector<8x256xf32>
    %77 = arith.mulf %75, %76 : vector<8x256xf32>
    %c0_30 = arith.constant 0 : index
    %c0_31 = arith.constant 0 : index
    %78 = vector.load %arg8[%c0_30, %c0_31] : memref<8x256xf32, #tpu.memory_space<vmem>>, vector<8x256xf32>
    %79 = arith.addf %77, %78 : vector<8x256xf32>
    %80 = tpu.concatenate %57, %79 in 1 : vector<8x256xf32>, vector<8x256xf32> -> vector<8x512xf32>
    %81 = math.tanh %80 : vector<8x512xf32>
    %82 = arith.mulf %32, %81 : vector<8x512xf32>
    %83 = vector.extract_strided_slice %17 {offsets = [0, 0], sizes = [8, 512], strides = [1, 1]} : vector<16x512xf32> to vector<8x512xf32>
    %84 = vector.extract_strided_slice %17 {offsets = [8, 0], sizes = [8, 512], strides = [1, 1]} : vector<16x512xf32> to vector<8x512xf32>
    %85 = tpu.concatenate %82, %33, %34, %83, %84 in 0 : vector<8x512xf32>, vector<8x512xf32>, vector<8x512xf32>, vector<8x512xf32>, vector<8x512xf32> -> vector<40x512xf32>
    %c0_32 = arith.constant 0 : index
    %c0_33 = arith.constant 0 : index
    %86 = vector.load %arg9[%c0_32, %c0_33] : memref<40x512xf32, #tpu.memory_space<vmem>>, vector<40x512xf32>
    tpu.vector_store %arg9[%c0_32, %c0_33], %85 {strides = array<i32>} : memref<40x512xf32, #tpu.memory_space<vmem>>, vector<40x512xf32>,
    return
  }
  func.func @transform_0(%arg0: i32) -> (i32, i32) {
    %c0_i32 = arith.constant 0 : i32
    %c0_i32_0 = arith.constant 0 : i32
    return %c0_i32, %arg0 : i32, i32
  }
  func.func @transform_1(%arg0: i32) -> (i32, i32) {
    %c0_i32 = arith.constant 0 : i32
    %c0_i32_0 = arith.constant 0 : i32
    return %c0_i32, %arg0 : i32, i32
  }
  func.func @transform_2(%arg0: i32) -> (i32, i32) {
    %c0_i32 = arith.constant 0 : i32
    %c0_i32_0 = arith.constant 0 : i32
    %c0_i32_1 = arith.constant 0 : i32
    return %c0_i32, %c0_i32_0 : i32, i32
  }
  func.func @transform_3(%arg0: i32) -> (i32, i32) {
    %c0_i32 = arith.constant 0 : i32
    %c0_i32_0 = arith.constant 0 : i32
    %c0_i32_1 = arith.constant 0 : i32
    return %c0_i32, %c0_i32_0 : i32, i32
  }
  func.func @transform_4(%arg0: i32) -> (i32, i32) {
    %c0_i32 = arith.constant 0 : i32
    %c0_i32_0 = arith.constant 0 : i32
    %c0_i32_1 = arith.constant 0 : i32
    return %c0_i32, %c0_i32_0 : i32, i32
  }
  func.func @transform_5(%arg0: i32) -> (i32, i32) {
    %c0_i32 = arith.constant 0 : i32
    %c0_i32_0 = arith.constant 0 : i32
    %c0_i32_1 = arith.constant 0 : i32
    return %c0_i32, %c0_i32_0 : i32, i32
  }
  func.func @transform_6(%arg0: i32) -> (i32, i32) {
    %c0_i32 = arith.constant 0 : i32
    %c0_i32_0 = arith.constant 0 : i32
    %c0_i32_1 = arith.constant 0 : i32
    return %c0_i32, %c0_i32_0 : i32, i32
  }
  func.func @transform_7(%arg0: i32) -> (i32, i32) {
    %c0_i32 = arith.constant 0 : i32
    %c0_i32_0 = arith.constant 0 : i32
    %c0_i32_1 = arith.constant 0 : i32
    return %c0_i32, %c0_i32_0 : i32, i32
  }
  func.func @transform_8(%arg0: i32) -> (i32, i32) {
    %c0_i32 = arith.constant 0 : i32
    %c0_i32_0 = arith.constant 0 : i32
    return %c0_i32, %arg0 : i32, i32
  }
}

</mosaic_0001>

<bundles_post_ra>
// kernel: tpu_custom_call.1
= control target key start
LH: loop header
LB: loop body
LE: loop exit
PB: predicated region body
PF: predicated region fallthrough
CT: control target
= control target key end

     0   :  { %13 = vsyncpa [#allocation3], 0  ;;  %s1580_s0 = inlined_call_operand.hbm [shape: bf16[180,512], index: 0, kind: input, shape index: {}]   ;;  %s1581_s1 = inlined_call_operand.vmem [shape: f32[16,512], index: 1, kind: input, shape index: {}]   ;;  %s1582_s2 = inlined_call_operand.hbm [shape: bf16[56,180], index: 2, kind: input, shape index: {}]   ;;  %s1583_s3 = inlined_call_operand.vmem [shape: f32[56,1], index: 3, kind: input, shape index: {}]   ;;  %s1584_s4 = inlined_call_operand.vmem [shape: bf16[8,16], index: 4, kind: input, shape index: {}]   ;;  %s1585_s5 = inlined_call_operand.vmem [shape: f32[8,1], index: 5, kind: input, shape index: {}]   ;;  %s1586_s6 = inlined_call_operand.hbm [shape: f32[8,256], index: 6, kind: input, shape index: {}]   ;;  %s1587_s7 = inlined_call_operand.hbm [shape: f32[8,256], index: 7, kind: input, shape index: {}]   ;;  %s1588_s8 = inlined_call_operand.hbm [shape: f32[40,512], index: 8, kind: output, shape index: {}]  }
   0x1   :  { %14 = vsyncpa [#allocation6], 0 }
   0x2   :  { %15 = vsyncpa [#allocation9], 0 }
   0x3   :  { %16 = vsyncpa [#allocation4], 0  ;;  %s1411_s27 = smov [#allocation5]  }
   0x4   :  { %s36_s28 = sshll.u32 %s1411_s27, 4  ;;  %s37_s28 = int_to_ptr.vmem [resolvable:$true] %s36_s28 }
   0x5   :  { %s1311_s29 = scalar_lea.vmem %s37_s28, 896  ;;  %p1316_p1 = scmp.lt.s32.totalorder %s37_s28, %s37_s28 }
   0x6   :  { %p1312_p0 = scmp.ne.s32.totalorder %s37_s28, %s1311_s29  ;;  %p1317_p2 = scmp.lt.s32.totalorder %s1311_s29, %s1311_s29 }
   0x8   :  { %p1318_p3 = por %p1317_p2, %p1316_p1 }
   0xa   :  { %p1319_p4 = pnand %p1318_p3, %p1312_p0 }
   0xc   :  { %1322 = shalt.err (!%p1319_p4)
}
   0xd   :  { %s1412_s30 = smov 128   ;;  %s1413_s9 = smov 8  }
   0xe   :  { %42 = dma.hbm_to_vmem [thread:$0]  %s1582_s2, 896, %s37_s28, [#allocation6], %s1412_s30, %s1412_s30, %s1413_s9  }
   0xf   :  { %s1414_s12 = smov [#allocation2]  }
  0x10   :  { %s22_s13 = sshll.u32 %s1414_s12, 4  ;;  %s23_s13 = int_to_ptr.vmem [resolvable:$true] %s22_s13 }
  0x11   :  { %s1331_s14 = scalar_lea.vmem %s23_s13, 5888  ;;  %p1336_p6 = scmp.lt.s32.totalorder %s23_s13, %s23_s13 }
  0x12   :  { %p1332_p5 = scmp.ne.s32.totalorder %s23_s13, %s1331_s14  ;;  %p1337_p7 = scmp.lt.s32.totalorder %s1331_s14, %s1331_s14 }
  0x14   :  { %p1338_p8 = por %p1337_p7, %p1336_p6 }
  0x16   :  { %p1339_p9 = pnand %p1338_p8, %p1332_p5 }
  0x18   :  { %1342 = shalt.err (!%p1339_p9)
}
  0x19   :  { %s1415_s15 = smov 256   ;;  %s1416_s16 = smov 16  }
  0x1a   :  { %28 = dma.hbm_to_vmem [thread:$0]  %s1580_s0, 5888, %s23_s13, [#allocation3], %s1415_s15, %s1415_s15, %s1416_s16  }
  0x1b   :  { %s1417_s19 = smov [#allocation7]   ;;  %s1418_s21 = smov [#allocation8]  }
  0x1c   :  { %s55_s20 = sshll.u32 %s1417_s19, 4  ;;  %s65_s2 = sshll.u32 %s1418_s21, 4  ;;  %s56_s20 = int_to_ptr.vmem [resolvable:$true] %s55_s20  ;;  %s66_s2 = int_to_ptr.vmem [resolvable:$true] %s65_s2 }
  0x1d   :  { %s1351_s22 = scalar_lea.vmem %s56_s20, 256  ;;  %p1356_p11 = scmp.lt.s32.totalorder %s56_s20, %s56_s20 }
  0x1e   :  { %p1352_p10 = scmp.ne.s32.totalorder %s56_s20, %s1351_s22  ;;  %p1357_p12 = scmp.lt.s32.totalorder %s1351_s22, %s1351_s22 }
  0x20   :  { %p1358_p13 = por %p1357_p12, %p1356_p11 }
  0x22   :  { %p1359_p0 = pnand %p1358_p13, %p1352_p10 }
  0x24   :  { %1362 = shalt.err (!%p1359_p0)
}
  0x25   :  { %58 = dma.hbm_to_vmem [thread:$0]  %s1586_s6, 256, %s56_s20, [#allocation6]  }
  0x26   :  { %s1371_s25 = scalar_lea.vmem %s66_s2, 256  ;;  %p1376_p2 = scmp.lt.s32.totalorder %s66_s2, %s66_s2 }
  0x27   :  { %p1372_p1 = scmp.ne.s32.totalorder %s66_s2, %s1371_s25  ;;  %p1377_p3 = scmp.lt.s32.totalorder %s1371_s25, %s1371_s25 }
  0x29   :  { %p1378_p4 = por %p1377_p3, %p1376_p2 }
  0x2b   :  { %p1379_p5 = pnand %p1378_p4, %p1372_p1 }
  0x2d   :  { %1382 = shalt.err (!%p1379_p5)
}
  0x2e   :  { %68 = dma.hbm_to_vmem [thread:$0]  %s1587_s7, 256, %s66_s2, [#allocation9]  }
  0x2f   :  { %1403 = dma.done.wait [#allocation3], 5888  }
  0x30   :  { %1404 = vsyncadd [#allocation3], 4294961408 }
  0x31   :  { %1405 = dma.done.wait [#allocation6], 1152  }
  0x32   :  { %1406 = vsyncadd [#allocation6], 4294966144 }
  0x33   :  { %1407 = dma.done.wait [#allocation9], 256  }
  0x34   :  { %1408 = vsyncadd [#allocation9], 4294967040  ;;  %v1419_v0 = vmov 0   ;;  %v1114_v1 = vld [vmem:[#allocation2 + $0xe4] ss:$16 sps:$4 sm:$0xff]   ;;  %vm453_vm0 = vcmask 1041408  }
  0x35   :  { %1112 = vset.pattern.permute.xlu0 %v1419_v0  ;;  %1113 = vset.pattern.permute.xlu1 %v1419_v0  ;;  %v1116_v2 = vld [vmem:[#allocation2 + $0xec] ss:$16 sps:$4 sm:$0xff]   ;;  %v1118_v3 = vld [vmem:[#allocation2 + $0xe0] ss:$16 sps:$4 sm:$0xff]   ;;  %v1119_v4 = vld [vmem:[#allocation2 + $0xe8] ss:$16 sps:$4 sm:$0xff]  }
  0x36   :  { %466 = vmatprep.subr.bf16.mxu0 %v1114_v1  ;;  %537 = vmatprep.subr.bf16.mxu1 %v1116_v2  ;;  %v1120_v5 = vld [vmem:[#allocation2 + $0xc4] ss:$16 sps:$4 sm:$0xff]   ;;  %v1122_v6 = vld [vmem:[#allocation2 + $0xcc] ss:$16 sps:$4 sm:$0xff]   ;;  %v1124_v7 = vld [vmem:[#allocation2 + $0xc0] ss:$16 sps:$4 sm:$0xff]  }
  0x37   :  { %467 = vmatpush1.bf16.msra.mxu0 %v1118_v3  ;;  %538 = vmatpush1.bf16.msra.mxu1 %v1119_v4  ;;  %v1125_v8 = vld [vmem:[#allocation2 + $0xc8] ss:$16 sps:$4 sm:$0xff]   ;;  %v1126_v9 = vld [vmem:[#allocation2 + $0xa4] ss:$16 sps:$4 sm:$0xff]   ;;  %v1128_v10 = vld [vmem:[#allocation2 + $0xac] ss:$16 sps:$4 sm:$0xff]  }
  0x38   :  { %468 = vmatprep.subr.bf16.mxu0 %v1120_v5  ;;  %539 = vmatprep.subr.bf16.mxu1 %v1122_v6  ;;  %v1130_v11 = vld [vmem:[#allocation2 + $0xa0] ss:$16 sps:$4 sm:$0xff]   ;;  %v1131_v12 = vld [vmem:[#allocation2 + $0xa8] ss:$16 sps:$4 sm:$0xff]   ;;  %v1132_v13 = vld [vmem:[#allocation2 + $0x84] ss:$16 sps:$4 sm:$0xff]  }
  0x39   :  { %v1134_v14 = vld [vmem:[#allocation2 + $0x8c] ss:$16 sps:$4 sm:$0xff]   ;;  %v1136_v15 = vld [vmem:[#allocation2 + $0x80] ss:$16 sps:$4 sm:$0xff]   ;;  %v1137_v16 = vld [vmem:[#allocation2 + $0x88] ss:$16 sps:$4 sm:$0xff]  }
  0x3a   :  { %v1138_v17 = vld [vmem:[#allocation2 + $0x64] ss:$16 sps:$4 sm:$0xff]   ;;  %v1140_v18 = vld [vmem:[#allocation2 + $0x6c] ss:$16 sps:$4 sm:$0xff]   ;;  %v1142_v19 = vld [vmem:[#allocation2 + $0x60] ss:$16 sps:$4 sm:$0xff]  }
  0x3b   :  { %469 = vmatpush1.bf16.msra.mxu0 %v1124_v7  ;;  %540 = vmatpush1.bf16.msra.mxu1 %v1125_v8  ;;  %v1143_v20 = vld [vmem:[#allocation2 + $0x68] ss:$16 sps:$4 sm:$0xff]   ;;  %v1144_v21 = vld [vmem:[#allocation2 + $0x44] ss:$16 sps:$4 sm:$0xff]   ;;  %v1146_v22 = vld [vmem:[#allocation2 + $0x4c] ss:$16 sps:$4 sm:$0xff]  }
  0x3c   :  { %470 = vmatprep.subr.bf16.mxu0 %v1126_v9  ;;  %541 = vmatprep.subr.bf16.mxu1 %v1128_v10  ;;  %v1148_v23 = vld [vmem:[#allocation2 + $0x40] ss:$16 sps:$4 sm:$0xff]   ;;  %v1149_v24 = vld [vmem:[#allocation2 + $0x48] ss:$16 sps:$4 sm:$0xff]   ;;  %v1150_v25 = vld [vmem:[#allocation2 + $0x24] ss:$16 sps:$4 sm:$0xff]  }
  0x3d   :  { %v1152_v26 = vld [vmem:[#allocation2 + $0x2c] ss:$16 sps:$4 sm:$0xff]   ;;  %v1154_v27 = vld [vmem:[#allocation2 + $0x20] ss:$16 sps:$4 sm:$0xff]   ;;  %v1155_v28 = vld [vmem:[#allocation2 + $0x28] ss:$16 sps:$4 sm:$0xff]  }
  0x3e   :  { %v1156_v29 = vld [vmem:[#allocation2 + $0x4] ss:$16 sps:$4 sm:$0xff]   ;;  %v1158_v30 = vld [vmem:[#allocation2 + $0xc] ss:$16 sps:$4 sm:$0xff]   ;;  %v1160_v33 = vld [vmem:[#allocation2] ss:$16 sps:$4 sm:$0xff]  }
  0x3f   :  { %471 = vmatpush1.bf16.msra.mxu0 %v1130_v11  ;;  %542 = vmatpush1.bf16.msra.mxu1 %v1131_v12  ;;  %v133_v31 = vld [vmem:[#allocation2 + $0x160] sm:$0x33]  ;;  %v134_v32 = vld [vmem:[#allocation2 + $0x168] sm:$0x33]  ;;  %v1186_v39 = vld [vmem:[#allocation5 + $0x4] ss:$8 sps:$4 sm:$0xff]  }
  0x40   :  { %472 = vmatprep.subr.bf16.mxu0 %v1132_v13  ;;  %543 = vmatprep.subr.bf16.mxu1 %v1134_v14  ;;  %v1161_v34 = vld [vmem:[#allocation2 + $0x8] ss:$16 sps:$4 sm:$0xff]   ;;  %v1053_v35 = vcombine.high %v133_v31, %v133_v31  ;;  %v1055_v36 = vcombine.high %v134_v32, %v134_v32  ;;  %v1052_v37 = vcombine.low %v133_v31, %v133_v31  ;;  %vm440_vm1 = vcmask 424960   ;;  %v1166_v40 = vld [vmem:[#allocation2 + $0x144] ss:$16 sps:$4 sm:$0xff]   ;;  %s1420_s19 = smov [#allocation10]  }
  0x41   :  { %v1054_v38 = vcombine.low %v134_v32, %v134_v32  ;;  %v1168_v43 = vld [vmem:[#allocation2 + $0x14c] ss:$16 sps:$4 sm:$0xff]   ;;  %1057 = vmatprep.mubr.msk.bf16.mxu0 %vm440_vm1, %v1186_v39  ;;  %1062 = vmatprep.mubr.msk.bf16.mxu1 %vm440_vm1, %v1186_v39  ;;  %v135_v44 = vld [vmem:[%s1583_s3] sm:$0xff]  ;;  %v137_v45 = vld [vmem:[%s1583_s3 + $0x10] sm:$0xff]  ;;  %vm755_vm2 = vcmask 130048   ;;  %s986_s20 = sshll.u32 %s1420_s19, 4  ;;  %s987_s20 = int_to_ptr.vmem [resolvable:$true] %s986_s20 }
  0x42   :  { %v455_v41 = vsel %vm453_vm0, %v1052_v37, 0  ;;  %v1170_v46 = vld [vmem:[#allocation2 + $0x140] ss:$16 sps:$4 sm:$0xff]   ;;  %144 = vperm.xlu0 %1112, %v135_v44   ;;  %154 = vperm.xlu1 %1113, %v137_v45   ;;  %v1171_v47 = vld [vmem:[#allocation2 + $0x148] ss:$16 sps:$4 sm:$0xff]   ;;  %s1383_s21 = scalar_lea.vmem %s987_s20, 2560  ;;  %p1388_p7 = scmp.lt.s32.totalorder %s987_s20, %s987_s20 }
  0x43   :  { %473 = vmatpush1.bf16.msra.mxu0 %v1136_v15  ;;  %544 = vmatpush1.bf16.msra.mxu1 %v1137_v16  ;;  %v461_v42 = vsel %vm453_vm0, %v1054_v38, 0  ;;  %v136_v48 = vld [vmem:[%s1583_s3 + $0x8] sm:$0xff]  ;;  %v138_v49 = vld [vmem:[%s1583_s3 + $0x18] sm:$0xff]  ;;  %v1172_v50 = vld [vmem:[#allocation2 + $0x124] ss:$16 sps:$4 sm:$0xff]   ;;  %p1384_p6 = scmp.ne.s32.totalorder %s987_s20, %s1383_s21  ;;  %p1389_p8 = scmp.lt.s32.totalorder %s1383_s21, %s1383_s21 }
  0x44   :  { %474 = vmatprep.subr.bf16.mxu0 %v1138_v17  ;;  %545 = vmatprep.subr.bf16.mxu1 %v1140_v18  ;;  %v1174_v51 = vld [vmem:[#allocation2 + $0x12c] ss:$16 sps:$4 sm:$0xff]   ;;  %v1176_v52 = vld [vmem:[#allocation2 + $0x120] ss:$16 sps:$4 sm:$0xff]   ;;  %v1177_v53 = vld [vmem:[#allocation2 + $0x128] ss:$16 sps:$4 sm:$0xff]  }
  0x45   :  { %v140_v54 = vld [vmem:[%s1583_s3 + $0x28] sm:$0xff]  ;;  %v139_v55 = vld [vmem:[%s1583_s3 + $0x20] sm:$0xff]  ;;  %v1184_v60 = vld [vmem:[#allocation5] ss:$8 sps:$4 sm:$0xff]   ;;  %p1390_p9 = por %p1389_p8, %p1388_p7 }
  0x46   :  { %149 = vperm.xlu0 %1112, %v136_v48   ;;  %159 = vperm.xlu1 %1113, %v138_v49   ;;  %v1178_v56 = vld [vmem:[#allocation2 + $0x104] ss:$16 sps:$4 sm:$0xff]   ;;  %v1180_v57 = vld [vmem:[#allocation2 + $0x10c] ss:$16 sps:$4 sm:$0xff]   ;;  %v1182_v58 = vld [vmem:[#allocation2 + $0x100] ss:$16 sps:$4 sm:$0xff]  }
  0x47   :  { %475 = vmatpush1.bf16.msra.mxu0 %v1142_v19  ;;  %546 = vmatpush1.bf16.msra.mxu1 %v1143_v20  ;;  %v1183_v59 = vld [vmem:[#allocation2 + $0x108] ss:$16 sps:$4 sm:$0xff]   ;;  %v1187_v61 = vld [vmem:[#allocation5 + $0x14] ss:$8 sps:$4 sm:$0xff]   ;;  %v1190_v63 = vld [vmem:[#allocation5 + $0x24] ss:$8 sps:$4 sm:$0xff]   ;;  %p1391_p10 = pnand %p1390_p9, %p1384_p6 }
  0x48   :  { %476 = vmatprep.subr.bf16.mxu0 %v1144_v21  ;;  %547 = vmatprep.subr.bf16.mxu1 %v1146_v22  ;;  %v1189_v62 = vld [vmem:[#allocation5 + $0x10] ss:$8 sps:$4 sm:$0xff]   ;;  %v1192_v1 = vld [vmem:[#allocation5 + $0x20] ss:$8 sps:$4 sm:$0xff]  }
  0x4a   :  { %169 = vperm.xlu1 %1113, %v140_v54   ;;  %164 = vperm.xlu0 %1112, %v139_v55  }
  0x4b   :  { %477 = vmatpush1.bf16.msra.mxu0 %v1148_v23  ;;  %548 = vmatpush1.bf16.msra.mxu1 %v1149_v24 }
  0x4c   :  { %478 = vmatprep.subr.bf16.mxu0 %v1150_v25  ;;  %549 = vmatprep.subr.bf16.mxu1 %v1152_v26 }
  0x4f   :  { %479 = vmatpush1.bf16.msra.mxu0 %v1154_v27  ;;  %550 = vmatpush1.bf16.msra.mxu1 %v1155_v28 }
  0x50   :  { %480 = vmatprep.subr.bf16.mxu0 %v1156_v29  ;;  %551 = vmatprep.subr.bf16.mxu1 %v1158_v30 }
  0x53   :  { %481 = vmatpush1.bf16.msra.mxu0 %v1160_v33  ;;  %552 = vmatpush1.bf16.msra.mxu1 %v1161_v34 }
  0x54   :  { %1056 = vmatprep.subr.msk.bf16.mxu0 %vm453_vm0, %v1053_v35  ;;  %1061 = vmatprep.subr.msk.bf16.mxu1 %vm453_vm0, %v1055_v36 }
  0x57   :  { %491 = vmatpush2.bf16.msra.mxu0 %v455_v41  ;;  %562 = vmatpush2.bf16.msra.mxu1 %v461_v42 }
  0x58   :  { %492 = vmatprep.subr.bf16.mxu0 %v1166_v40  ;;  %563 = vmatprep.subr.bf16.mxu1 %v1168_v43 }
  0x5b   :  { %493 = vmatpush2.bf16.msra.mxu0 %v1170_v46  ;;  %564 = vmatpush2.bf16.msra.mxu1 %v1171_v47 }
  0x5c   :  { %494 = vmatprep.subr.bf16.mxu0 %v1172_v50  ;;  %565 = vmatprep.subr.bf16.mxu1 %v1174_v51 }
  0x5f   :  { %495 = vmatpush2.bf16.msra.mxu0 %v1176_v52  ;;  %566 = vmatpush2.bf16.msra.mxu1 %v1177_v53 }
  0x60   :  { %496 = vmatprep.subr.bf16.mxu0 %v1178_v56  ;;  %567 = vmatprep.subr.bf16.mxu1 %v1180_v57 }
  0x63   :  { %497 = vmatpush2.bf16.msra.mxu0 %v1182_v58  ;;  %568 = vmatpush2.bf16.msra.mxu1 %v1183_v59 }
  0x66   :  { %499 = vmatmul.mubr.bf16.vlgmr.msra.gmra.mxu0 %v1184_v60  ;;  %570 = vmatmul.mubr.bf16.vlgmr.msra.gmra.mxu1 %v1184_v60 }
  0x67   :  { %1058 = vmatprep.mubr.msk.bf16.mxu0 %vm440_vm1, %v1187_v61  ;;  %1063 = vmatprep.mubr.msk.bf16.mxu1 %vm440_vm1, %v1187_v61 }
  0x6e   :  { %509 = vmatmul.mubr.bf16.gmra.mxu0 %v1189_v62  ;;  %580 = vmatmul.mubr.bf16.gmra.mxu1 %v1189_v62 }
  0x6f   :  { %1059 = vmatprep.mubr.msk.bf16.mxu0 %vm440_vm1, %v1190_v63  ;;  %1064 = vmatprep.mubr.msk.bf16.mxu1 %vm440_vm1, %v1190_v63 }
  0x76   :  { %519 = vmatmul.mubr.bf16.gmra.mxu0 %v1192_v1  ;;  %590 = vmatmul.mubr.bf16.gmra.mxu1 %v1192_v1 }
  0xbd   :  { %v145_v2 = vpop.permute.xlu0 %144  ;;  %v155_v16 = vpop.permute.xlu1 %154 }
  0xc1   :  { %v150_v7 = vpop.permute.xlu0 %149  ;;  %v160_v35 = vpop.permute.xlu1 %159 }
 0x126   :  { %v500_v3 = vpop.f32.mrf.mxu0  ;;  %v571_v4 = vpop.f32.mrf.mxu1 }
 0x127   :  { %v501_v5 = vadd.f32 %v500_v3, %v145_v2  ;;  %v572_v6 = vadd.f32 %v571_v4, %v145_v2 }
 0x128   :  { %v502_v8 = vpop.f32.mrf.mxu0  ;;  %v573_v9 = vpop.f32.mrf.mxu1 }
 0x129   :  { %v1066_v10 = vmul.f32 -1.442695, %v501_v5  ;;  %v1068_v11 = vmul.f32 -1.442695, %v572_v6  ;;  %v503_v12 = vadd.f32 %v502_v8, %v145_v2  ;;  %v574_v13 = vadd.f32 %v573_v9, %v145_v2 }
 0x12a   :  { %v504_v14 = vpop.f32.mrf.mxu0  ;;  %v575_v15 = vpop.f32.mrf.mxu1 }
 0x12b   :  { %1195 = vpow2.f32 %v1066_v10  ;;  %v1067_v17 = vmul.f32 -1.442695, %v503_v12  ;;  %v1069_v18 = vmul.f32 -1.442695, %v574_v13  ;;  %v505_v19 = vadd.f32 %v504_v14, %v150_v7 }
 0x12c   :  { %1197 = vpow2.f32 %v1068_v11  ;;  %v576_v20 = vadd.f32 %v575_v15, %v150_v7  ;;  %v506_v21 = vpop.f32.mrf.mxu0  ;;  %v577_v22 = vpop.f32.mrf.mxu1 }
 0x12d   :  { %1199 = vpow2.f32 %v1067_v17  ;;  %v1070_v23 = vmul.f32 -1.442695, %v505_v19  ;;  %v507_v24 = vadd.f32 %v506_v21, %v150_v7  ;;  %v578_v25 = vadd.f32 %v577_v22, %v150_v7 }
 0x12e   :  { %1201 = vpow2.f32 %v1069_v18  ;;  %v1072_v26 = vmul.f32 -1.442695, %v576_v20  ;;  %v510_v27 = vpop.f32.mrf.mxu0  ;;  %v581_v28 = vpop.f32.mrf.mxu1 }
 0x12f   :  { %1203 = vpow2.f32 %v1070_v23  ;;  %v1071_v29 = vmul.f32 -1.442695, %v507_v24  ;;  %v1073_v30 = vmul.f32 -1.442695, %v578_v25  ;;  %v511_v31 = vadd.f32 %v510_v27, %v155_v16  ;;  %v165_v23 = vpop.permute.xlu0 %164 }
 0x130   :  { %1205 = vpow2.f32 %v1072_v26  ;;  %v582_v32 = vadd.f32 %v581_v28, %v155_v16  ;;  %v512_v33 = vpop.f32.mrf.mxu0  ;;  %v583_v34 = vpop.f32.mrf.mxu1 }
 0x131   :  { %1207 = vpow2.f32 %v1071_v29  ;;  %v1074_v36 = vmul.f32 -1.442695, %v511_v31  ;;  %v513_v37 = vadd.f32 %v512_v33, %v155_v16  ;;  %v584_v38 = vadd.f32 %v583_v34, %v155_v16 }
 0x132   :  { %1209 = vpow2.f32 %v1073_v30  ;;  %v1076_v39 = vmul.f32 -1.442695, %v582_v32  ;;  %v514_v40 = vpop.f32.mrf.mxu0  ;;  %v585_v41 = vpop.f32.mrf.mxu1 }
 0x133   :  { %1211 = vpow2.f32 %v1074_v36  ;;  %v1075_v42 = vmul.f32 -1.442695, %v513_v37  ;;  %v1077_v43 = vmul.f32 -1.442695, %v584_v38  ;;  %v515_v44 = vadd.f32 %v514_v40, %v160_v35  ;;  %v170_v36 = vpop.permute.xlu1 %169 }
 0x134   :  { %1213 = vpow2.f32 %v1076_v39  ;;  %v586_v45 = vadd.f32 %v585_v41, %v160_v35  ;;  %v516_v46 = vpop.f32.mrf.mxu0  ;;  %v587_v47 = vpop.f32.mrf.mxu1 }
 0x135   :  { %1215 = vpow2.f32 %v1075_v42  ;;  %v1078_v48 = vmul.f32 -1.442695, %v515_v44  ;;  %v517_v49 = vadd.f32 %v516_v46, %v160_v35  ;;  %v588_v50 = vadd.f32 %v587_v47, %v160_v35 }
 0x136   :  { %1217 = vpow2.f32 %v1077_v43  ;;  %v1080_v51 = vmul.f32 -1.442695, %v586_v45  ;;  %v520_v4 = vpop.f32.mrf.mxu0  ;;  %v591_v7 = vpop.f32.mrf.mxu1 }
 0x137   :  { %1219 = vpow2.f32 %v1078_v48  ;;  %v1079_v52 = vmul.f32 -1.442695, %v517_v49  ;;  %v1081_v53 = vmul.f32 -1.442695, %v588_v50  ;;  %v521_v28 = vadd.f32 %v520_v4, %v165_v23 }
 0x138   :  { %v1196_v54 = vpop.eup %1195  ;;  %1221 = vpow2.f32 %v1080_v51  ;;  %v522_v14 = vpop.f32.mrf.mxu0  ;;  %v592_v32 = vadd.f32 %v591_v7, %v165_v23  ;;  %v717_v7 = vld [vmem:[%s1581_s1 + $0x28] sm:$0xff] }
 0x139   :  { %v1198_v55 = vpop.eup %1197  ;;  %v656_v56 = vadd.f32 1.0, %v1196_v54  ;;  %1223 = vpow2.f32 %v1079_v52  ;;  %v593_v17 = vpop.f32.mrf.mxu1  ;;  %v523_v34 = vadd.f32 %v522_v14, %v165_v23  ;;  %v712_v54 = vld [vmem:[%s1581_s1] sm:$0xff] }
 0x13a   :  { %v1200_v57 = vpop.eup %1199  ;;  %v658_v58 = vadd.f32 1.0, %v1198_v55  ;;  %1225 = vpow2.f32 %v1081_v53  ;;  %v524_v25 = vpop.f32.mrf.mxu0  ;;  %v594_v37 = vadd.f32 %v593_v17, %v165_v23 }
 0x13b   :  { %v1202_v59 = vpop.eup %1201  ;;  %1227 = vrcp.f32 %v656_v56  ;;  %v657_v60 = vadd.f32 1.0, %v1200_v57  ;;  %v595_v29 = vpop.f32.mrf.mxu1  ;;  %v525_v40 = vadd.f32 %v524_v25, %v170_v36  ;;  %v714_v56 = vld [vmem:[%s1581_s1 + $0x10] sm:$0xff] }
 0x13c   :  { %v1204_v61 = vpop.eup %1203  ;;  %1229 = vrcp.f32 %v658_v58  ;;  %v659_v62 = vadd.f32 1.0, %v1202_v59  ;;  %v526_v38 = vpop.f32.mrf.mxu0  ;;  %v596_v43 = vadd.f32 %v595_v29, %v170_v36  ;;  %v713_v58 = vld [vmem:[%s1581_s1 + $0x8] sm:$0xff] }
 0x13d   :  { %v1206_v63 = vpop.eup %1205  ;;  %1231 = vrcp.f32 %v657_v60  ;;  %v660_v1 = vadd.f32 1.0, %v1204_v61  ;;  %v597_v41 = vpop.f32.mrf.mxu1  ;;  %v527_v45 = vadd.f32 %v526_v38, %v170_v36  ;;  %v715_v60 = vld [vmem:[%s1581_s1 + $0x18] sm:$0xff] }
 0x13e   :  { %v1208_v2 = vpop.eup %1207  ;;  %1233 = vrcp.f32 %v659_v62  ;;  %v662_v3 = vadd.f32 1.0, %v1206_v63  ;;  %v598_v47 = vadd.f32 %v597_v41, %v170_v36  ;;  %v716_v63 = vld [vmem:[%s1581_s1 + $0x20] sm:$0xff] }
 0x13f   :  { %v1210_v5 = vpop.eup %1209  ;;  %1235 = vrcp.f32 %v660_v1  ;;  %v661_v6 = vadd.f32 1.0, %v1208_v2 }
 0x140   :  { %v1212_v8 = vpop.eup %1211  ;;  %1237 = vrcp.f32 %v662_v3  ;;  %v663_v9 = vadd.f32 1.0, %v1210_v5  ;;  %v718_v5 = vld [vmem:[%s1581_s1 + $0x30] sm:$0xff] }
 0x141   :  { %v1214_v10 = vpop.eup %1213  ;;  %1239 = vrcp.f32 %v661_v6  ;;  %v664_v11 = vadd.f32 1.0, %v1212_v8 }
 0x142   :  { %v1216_v12 = vpop.eup %1215  ;;  %1241 = vrcp.f32 %v663_v9  ;;  %v666_v13 = vadd.f32 1.0, %v1214_v10 }
 0x143   :  { %v1218_v15 = vpop.eup %1217  ;;  %1243 = vrcp.f32 %v664_v11  ;;  %v665_v16 = vadd.f32 1.0, %v1216_v12  ;;  %v719_v12 = vld [vmem:[%s1581_s1 + $0x38] sm:$0xff] }
 0x144   :  { %v1220_v18 = vpop.eup %1219  ;;  %1245 = vrcp.f32 %v666_v13  ;;  %v667_v19 = vadd.f32 1.0, %v1218_v15 }
 0x145   :  { %v1222_v20 = vpop.eup %1221  ;;  %1247 = vrcp.f32 %v665_v16  ;;  %v668_v21 = vadd.f32 1.0, %v1220_v18 }
 0x146   :  { %v1224_v22 = vpop.eup %1223  ;;  %1249 = vrcp.f32 %v667_v19  ;;  %v670_v24 = vadd.f32 1.0, %v1222_v20 }
 0x147   :  { %v1226_v26 = vpop.eup %1225  ;;  %1251 = vrcp.f32 %v668_v21  ;;  %v669_v27 = vadd.f32 1.0, %v1224_v22 }
 0x148   :  { %v1228_v30 = vpop.eup %1227  ;;  %1253 = vrcp.f32 %v670_v24  ;;  %v671_v31 = vadd.f32 1.0, %v1226_v26 }
 0x149   :  { %v1230_v33 = vpop.eup %1229  ;;  %1255 = vrcp.f32 %v669_v27 }
 0x14a   :  { %v1232_v35 = vpop.eup %1231  ;;  %1257 = vrcp.f32 %v671_v31 }
 0x14b   :  { %v1234_v39 = vpop.eup %1233  ;;  %1259 = vtanh.f32 %v521_v28 }
 0x14c   :  { %v1236_v42 = vpop.eup %1235  ;;  %1261 = vtanh.f32 %v592_v32 }
 0x14d   :  { %v1238_v44 = vpop.eup %1237  ;;  %1263 = vtanh.f32 %v523_v34 }
 0x14e   :  { %v1240_v46 = vpop.eup %1239  ;;  %1265 = vtanh.f32 %v594_v37 }
 0x14f   :  { %v1242_v48 = vpop.eup %1241  ;;  %1267 = vtanh.f32 %v525_v40 }
 0x150   :  { %v1244_v49 = vpop.eup %1243  ;;  %1269 = vtanh.f32 %v596_v43 }
 0x151   :  { %v1246_v50 = vpop.eup %1245  ;;  %1271 = vtanh.f32 %v527_v45  ;;  %v728_v61 = vmul.f32 %v1244_v49, %v712_v54 }
 0x152   :  { %v1248_v51 = vpop.eup %1247  ;;  %1273 = vtanh.f32 %v598_v47  ;;  %v730_v1 = vmul.f32 %v1246_v50, %v714_v56 }
 0x153   :  { %v1250_v52 = vpop.eup %1249  ;;  %v729_v3 = vmul.f32 %v1248_v51, %v713_v58 }
 0x154   :  { %v1252_v53 = vpop.eup %1251  ;;  %v731_v8 = vmul.f32 %v1250_v52, %v715_v60 }
 0x155   :  { %v1254_v55 = vpop.eup %1253  ;;  %v732_v13 = vmul.f32 %v1252_v53, %v716_v63 }
 0x156   :  { %v1256_v57 = vpop.eup %1255  ;;  %v734_v17 = vmul.f32 %v1254_v55, %v718_v5  ;;  %v744_v5 = vld [vmem:[%s1584_s4] sm:$0xf] }
 0x157   :  { %v1258_v59 = vpop.eup %1257  ;;  %v733_v20 = vmul.f32 %v1256_v57, %v717_v7 }
 0x158   :  { %v1260_v62 = vpop.eup %1259  ;;  %v735_v24 = vmul.f32 %v1258_v59, %v719_v12  ;;  %v141_v59 = vld [vmem:[%s1583_s3 + $0x30] sm:$0xff] }
 0x159   :  { %v1262_v2 = vpop.eup %1261  ;;  %v720_v4 = vmul.f32 %v1260_v62, %v1228_v30 }
 0x15a   :  { %v1264_v6 = vpop.eup %1263  ;;  %v722_v9 = vmul.f32 %v1262_v2, %v1230_v33 }
 0x15b   :  { %v1266_v10 = vpop.eup %1265  ;;  %v721_v11 = vmul.f32 %v1264_v6, %v1232_v35  ;;  %v736_v14 = vadd.f32 %v728_v61, %v720_v4  ;;  %973 = vst [vmem:[#allocation10 + $0x60] sm:$0xff] %v720_v4 }
 0x15c   :  { %v1268_v15 = vpop.eup %1267  ;;  %v723_v16 = vmul.f32 %v1266_v10, %v1234_v39  ;;  %v738_v18 = vadd.f32 %v730_v1, %v722_v9  ;;  %975 = vst [vmem:[#allocation10 + $0x70] sm:$0xff] %v722_v9 }
 0x15d   :  { %v1270_v19 = vpop.eup %1269  ;;  %v737_v21 = vadd.f32 %v729_v3, %v721_v11  ;;  %974 = vst [vmem:[#allocation10 + $0x68] sm:$0xff] %v721_v11  ;;  %v724_v22 = vmul.f32 %v1268_v15, %v1236_v42  ;;  %965 = vst [vmem:[#allocation10 + $0x20] sm:$0xff] %v736_v14 }
 0x15e   :  { %v1272_v23 = vpop.eup %1271  ;;  %v739_v25 = vadd.f32 %v731_v8, %v723_v16  ;;  %976 = vst [vmem:[#allocation10 + $0x78] sm:$0xff] %v723_v16  ;;  %v726_v26 = vmul.f32 %v1270_v19, %v1238_v44  ;;  %967 = vst [vmem:[#allocation10 + $0x30] sm:$0xff] %v738_v18  ;;  %v88_v44 = vld [vmem:[#allocation5 + $0x30] sm:$0xff] }
 0x15f   :  { %v1274_v27 = vpop.eup %1273  ;;  %v725_v28 = vmul.f32 %v1272_v23, %v1240_v46  ;;  %966 = vst [vmem:[#allocation10 + $0x28] sm:$0xff] %v737_v21  ;;  %v740_v29 = vadd.f32 %v732_v13, %v724_v22  ;;  %977 = vst [vmem:[#allocation10 + $0x80] sm:$0xff] %v724_v22  ;;  %v1007_v45 = vcombine.high %v88_v44, %v88_v44 }
 0x160   :  { %v727_v30 = vmul.f32 %v1274_v27, %v1242_v48  ;;  %968 = vst [vmem:[#allocation10 + $0x38] sm:$0xff] %v739_v25  ;;  %v742_v31 = vadd.f32 %v734_v17, %v726_v26  ;;  %979 = vst [vmem:[#allocation10 + $0x90] sm:$0xff] %v726_v26  ;;  %v1006_v46 = vcombine.low %v88_v44, %v88_v44 }
 0x161   :  { %v741_v32 = vadd.f32 %v733_v20, %v725_v28  ;;  %978 = vst [vmem:[#allocation10 + $0x88] sm:$0xff] %v725_v28  ;;  %969 = vst [vmem:[#allocation10 + $0x40] sm:$0xff] %v740_v29  ;;  %v869_v35 = vadd.f32 %v740_v29, %v736_v14  ;;  %v745_v38 = vpack.c.bf16 %v740_v29, %v736_v14  ;;  %1060 = vmatprep.mubr.msk.bf16.mxu0 %vm440_vm1, %v1007_v45 }
 0x162   :  { %v743_v33 = vadd.f32 %v735_v24, %v727_v30  ;;  %980 = vst [vmem:[#allocation10 + $0x98] sm:$0xff] %v727_v30  ;;  %971 = vst [vmem:[#allocation10 + $0x50] sm:$0xff] %v742_v31  ;;  %v747_v39 = vpack.c.bf16 %v742_v31, %v738_v18  ;;  %v1532_v42 = vadd.f32 %v742_v31, %v738_v18  ;;  %1065 = vmatprep.mubr.msk.bf16.mxu1 %vm440_vm1, %v1007_v45  ;;  %v749_v31 = vld [vmem:[%s1585_s5] sm:$0xff] }
 0x163   :  { %v746_v34 = vpack.c.bf16 %v741_v32, %v737_v21  ;;  %970 = vst [vmem:[#allocation10 + $0x48] sm:$0xff] %v741_v32  ;;  %v870_v36 = vadd.f32 %v741_v32, %v737_v21  ;;  %529 = vmatmul.mubr.bf16.gmra.mxu0 %v1006_v46  ;;  %600 = vmatmul.mubr.bf16.gmra.mxu1 %v1006_v46 }
 0x164   :  { %v748_v37 = vpack.c.bf16 %v743_v33, %v739_v25  ;;  %972 = vst [vmem:[#allocation10 + $0x58] sm:$0xff] %v743_v33  ;;  %v1530_v41 = vadd.f32 %v743_v33, %v739_v25  ;;  %791 = vmatprep.mubr.bf16.mxu0 %v1419_v0  ;;  %832 = vmatprep.mubr.bf16.mxu1 %v1419_v0 }
 0x165   :  { %773 = vmatprep.subr.bf16.mxu0 %v746_v34  ;;  %v873_v40 = vadd.f32 %v870_v36, %v869_v35 }
 0x166   :  { %814 = vmatprep.subr.bf16.mxu1 %v748_v37  ;;  %774 = vmatpush1.bf16.msra.mxu0 %v745_v38  ;;  %v915_v43 = vadd.f32 %v1530_v41, %v1532_v42 }
 0x167   :  { %815 = vmatpush1.bf16.msra.mxu1 %v747_v39  ;;  %874 = vadd.xlane.f32.xlu0 %v873_v40 }
 0x16b   :  { %916 = vadd.xlane.f32.xlu0 %v915_v43  ;;  %1082 = vmatmul.mubr.msk.bf16.vlgmr.msra.gmra.mxu0 %vm755_vm2, %v744_v5 }
 0x16c   :  { %1083 = vmatmul.mubr.msk.bf16.vlgmr.msra.gmra.mxu1 %vm755_vm2, %v744_v5 }
 0x1f0   :  { %v875_v47 = vpop.xlane.xlu0 %874 }
 0x1f1   :  { %v876_v48 = vrot.slane %v875_v47, 4 }
 0x1f3   :  { %v877_v49 = vadd.f32 %v876_v48, %v875_v47 }
 0x1f4   :  { %v917_v13 = vpop.xlane.xlu0 %916 }
 0x1f5   :  { %v878_v50 = vrot.slane %v877_v49, 2  ;;  %v918_v14 = vrot.slane %v917_v13, 4 }
 0x1f7   :  { %v879_v51 = vadd.f32 %v878_v50, %v877_v49  ;;  %v919_v15 = vadd.f32 %v918_v14, %v917_v13 }
 0x1f9   :  { %v880_v52 = vrot.slane %v879_v51, 1  ;;  %v920_v17 = vrot.slane %v919_v15, 2 }
 0x1fb   :  { %v881_v53 = vadd.f32 %v880_v52, %v879_v51  ;;  %v921_v18 = vadd.f32 %v920_v17, %v919_v15 }
 0x1fd   :  { %1088 = vpush %v881_v53  ;;  %v922_v19 = vrot.slane %v921_v18, 1 }
 0x1ff   :  { %v923_v21 = vadd.f32 %v922_v19, %v921_v18 }
 0x223   :  { %v530_v60 = vpop.f32.mrf.mxu0  ;;  %v1551_v61 = vpop.f32.mrf.mxu1 }
 0x225   :  { %v532_v62 = vpop.f32.mrf.mxu0  ;;  %v603_v63 = vpop.f32.mrf.mxu1 }
 0x227   :  { %v534_v1 = vpop.f32.mrf.mxu0  ;;  %v605_v2 = vpop.f32.mrf.mxu1 }
 0x228   :  { %v908_v2 = vld [vmem:[#allocation7 + $0x8] sm:$0xff] }
 0x229   :  { %v535_v3 = vpop.f32.mrf.mxu0  ;;  %v606_v4 = vpop.f32.mrf.mxu1 }
 0x22a   :  { %v911_v4 = vld [vmem:[#allocation8] sm:$0xff] }
 0x22b   :  { %v793_v33 = vpop.f32.mrf.mxu0 }
 0x22c   :  { %v834_v28 = vpop.f32.mrf.mxu1 }
 0x22d   :  { %v795_v34 = vpop.f32.mrf.mxu0 }
 0x22e   :  { %s1089_s1 = spop %1088  ;;  %v836_v29 = vpop.f32.mrf.mxu1 }
 0x22f   :  { %s883_s27 = smul.f32 0.00048828125, %s1089_s1 }
 0x230   :  { %v838_v30 = vpop.f32.mrf.mxu1 }
 0x231   :  { %v884_v54 = vstv %s883_s27 }
 0x232   :  { %v1540_v55 = vsub.f32 %v869_v35, %v884_v54  ;;  %v1542_v56 = vsub.f32 %v870_v36, %v884_v54  ;;  %v839_v32 = vpop.f32.mrf.mxu1  ;;  %v797_v35 = vpop.f32.mrf.mxu0 }
 0x234   :  { %v887_v57 = vmul.f32 %v1540_v55, %v1540_v55  ;;  %v888_v0 = vmul.f32 %v1542_v56, %v1542_v56  ;;  %v798_v36 = vpop.f32.mrf.mxu0 }
 0x236   :  { %v889_v58 = vadd.f32 %v888_v0, %v887_v57 }
 0x238   :  { %890 = vadd.xlane.f32.xlu1 %v889_v58 }
 0x249   :  { %174 = vperm.xlu1 %1113, %v141_v59  }
 0x2c1   :  { %v891_v6 = vpop.xlane.xlu1 %890 }
 0x2c2   :  { %v892_v7 = vrot.slane %v891_v6, 4 }
 0x2c4   :  { %v893_v8 = vadd.f32 %v892_v7, %v891_v6  ;;  %v912_v6 = vld [vmem:[#allocation8 + $0x8] sm:$0xff] }
 0x2c5   :  { %v175_v40 = vpop.permute.xlu1 %174 }
 0x2c6   :  { %v894_v9 = vrot.slane %v893_v8, 2  ;;  %v531_v43 = vadd.f32 %v530_v60, %v175_v40  ;;  %v533_v44 = vadd.f32 %v532_v62, %v175_v40  ;;  %v602_v45 = vadd.f32 %v1551_v61, %v175_v40  ;;  %v907_v62 = vld [vmem:[#allocation7] sm:$0xff] }
 0x2c7   :  { %v604_v46 = vadd.f32 %v603_v63, %v175_v40 }
 0x2c8   :  { %v895_v10 = vadd.f32 %v894_v9, %v893_v8 }
 0x2ca   :  { %v896_v11 = vrot.slane %v895_v10, 1 }
 0x2cc   :  { %v897_v12 = vadd.f32 %v896_v11, %v895_v10 }
 0x2ce   :  { %1090 = vpush %v897_v12 }
 0x2ff   :  { %s1091_s3 = spop %1090 }
 0x300   :  { %s899_s10 = smul.f32 0.00048828125, %s1091_s3 }
 0x302   :  { %s900_s11 = sadd.f32 1e-05, %s899_s10 }
 0x304   :  { %v901_v16 = vstv %s900_s11 }
 0x305   :  { %1275 = vrsqrt.f32 %v901_v16 }
 0x312   :  { %v1276_v20 = vpop.eup %1275 }
 0x313   :  { %1092 = vpush %v1276_v20 }
 0x314   :  { %1094 = vpush %v923_v21 }
 0x344   :  { %s1556_s4 = spop %1092 }
 0x345   :  { %s1095_s12 = spop %1094  ;;  %v904_v60 = vstv %s1556_s4 }
 0x346   :  { %s925_s13 = smul.f32 0.00048828125, %s1095_s12  ;;  %v905_v61 = vmul.f32 %v904_v60, %v1540_v55  ;;  %v906_v63 = vmul.f32 %v904_v60, %v1542_v56 }
 0x348   :  { %v926_v22 = vstv %s925_s13  ;;  %v909_v3 = vmul.f32 %v907_v62, %v905_v61  ;;  %v910_v5 = vmul.f32 %v908_v2, %v906_v63 }
 0x349   :  { %v1559_v23 = vsub.f32 %v1532_v42, %v926_v22  ;;  %v1562_v24 = vsub.f32 %v1530_v41, %v926_v22 }
 0x34a   :  { %v913_v7 = vadd.f32 %v911_v4, %v909_v3  ;;  %v914_v9 = vadd.f32 %v912_v6, %v910_v5 }
 0x34b   :  { %v929_v25 = vmul.f32 %v1559_v23, %v1559_v23  ;;  %v930_v26 = vmul.f32 %v1562_v24, %v1562_v24 }
 0x34d   :  { %v931_v27 = vadd.f32 %v930_v26, %v929_v25 }
 0x34f   :  { %932 = vadd.xlane.f32.xlu0 %v931_v27 }
 0x365   :  { %752 = vperm.xlu0 %1112, %v749_v31  }
 0x3d8   :  { %v933_v37 = vpop.xlane.xlu0 %932 }
 0x3d9   :  { %v934_v38 = vrot.slane %v933_v37, 4 }
 0x3db   :  { %v935_v39 = vadd.f32 %v934_v38, %v933_v37 }
 0x3dd   :  { %v936_v41 = vrot.slane %v935_v39, 2 }
 0x3df   :  { %v937_v42 = vadd.f32 %v936_v41, %v935_v39 }
 0x3e0   :  { %v753_v47 = vpop.permute.xlu0 %752 }
 0x3e1   :  { %v794_v48 = vadd.f32 %v793_v33, %v753_v47  ;;  %v835_v49 = vadd.f32 %v834_v28, %v753_v47  ;;  %v837_v50 = vadd.f32 %v836_v29, %v753_v47  ;;  %v796_v51 = vadd.f32 %v795_v34, %v753_v47 }
 0x3e2   :  { %v938_v52 = vrot.slane %v937_v42, 1 }
 0x3e3   :  { %v841_v53 = vadd.f32 %v794_v48, %v531_v43  ;;  %v843_v54 = vadd.f32 %v835_v49, %v602_v45  ;;  %v844_v57 = vadd.f32 %v837_v50, %v604_v46  ;;  %v842_v0 = vadd.f32 %v796_v51, %v533_v44 }
 0x3e4   :  { %v939_v58 = vadd.f32 %v938_v52, %v937_v42 }
 0x3e5   :  { %v1084_v59 = vmul.f32 -1.442695, %v841_v53  ;;  %v1085_v1 = vmul.f32 -1.442695, %v842_v0  ;;  %v1086_v19 = vmul.f32 -1.442695, %v843_v54 }
 0x3e6   :  { %1096 = vpush %v939_v58  ;;  %v1087_v20 = vmul.f32 -1.442695, %v844_v57 }
 0x3e7   :  { %1277 = vpow2.f32 %v1084_v59 }
 0x3e8   :  { %1279 = vpow2.f32 %v1085_v1 }
 0x3e9   :  { %1281 = vtanh.f32 %v913_v7 }
 0x3f4   :  { %v1278_v8 = vpop.eup %1277 }
 0x3f5   :  { %v857_v10 = vadd.f32 1.0, %v1278_v8  ;;  %v1280_v11 = vpop.eup %1279 }
 0x3f6   :  { %v858_v12 = vadd.f32 1.0, %v1280_v11  ;;  %v1282_v55 = vpop.eup %1281 }
 0x3f7   :  { %1283 = vrcp.f32 %v857_v10 }
 0x3f8   :  { %1285 = vtanh.f32 %v914_v9 }
 0x3f9   :  { %1287 = vrcp.f32 %v858_v12 }
 0x404   :  { %v1284_v13 = vpop.eup %1283 }
 0x405   :  { %v957_v14 = vmul.f32 %v1284_v13, %v1282_v55  ;;  %v1286_v15 = vpop.eup %1285 }
 0x406   :  { %v1288_v56 = vpop.eup %1287 }
 0x407   :  { %961 = vst [vmem:[#allocation10] sm:$0xff] %v957_v14  ;;  %v958_v16 = vmul.f32 %v1288_v56, %v1286_v15 }
 0x409   :  { %962 = vst [vmem:[#allocation10 + $0x8] sm:$0xff] %v958_v16 }
 0x417   :  { %s1097_s5 = spop %1096 }
 0x418   :  { %s941_s16 = smul.f32 0.00048828125, %s1097_s5 }
 0x41a   :  { %s942_s17 = sadd.f32 1e-05, %s941_s16 }
 0x41c   :  { %v943_v17 = vstv %s942_s17 }
 0x41d   :  { %1289 = vrsqrt.f32 %v943_v17 }
 0x41e   :  { %1291 = vpow2.f32 %v1086_v19 }
 0x41f   :  { %1293 = vpow2.f32 %v1087_v20 }
 0x42a   :  { %v1290_v18 = vpop.eup %1289 }
 0x42b   :  { %1098 = vpush %v1290_v18  ;;  %v1292_v21 = vpop.eup %1291 }
 0x42c   :  { %v1294_v22 = vpop.eup %1293  ;;  %v859_v26 = vadd.f32 1.0, %v1292_v21 }
 0x42d   :  { %v860_v29 = vadd.f32 1.0, %v1294_v22 }
 0x42e   :  { %1295 = vrcp.f32 %v859_v26 }
 0x42f   :  { %1297 = vrcp.f32 %v860_v29 }
 0x43b   :  { %v1296_v34 = vpop.eup %1295 }
 0x43c   :  { %v1298_v35 = vpop.eup %1297 }
 0x45c   :  { %s1099_s18 = spop %1098 }
 0x45d   :  { %v946_v25 = vstv %s1099_s18 }
 0x45e   :  { %v947_v27 = vmul.f32 %v946_v25, %v1559_v23  ;;  %v948_v28 = vmul.f32 %v946_v25, %v1562_v24 }
 0x460   :  { %v949_v30 = vmul.f32 %v947_v27, %v907_v62  ;;  %v950_v31 = vmul.f32 %v948_v28, %v908_v2 }
 0x462   :  { %v951_v32 = vadd.f32 %v949_v30, %v911_v4  ;;  %v952_v33 = vadd.f32 %v950_v31, %v912_v6 }
 0x464   :  { %1299 = vtanh.f32 %v951_v32 }
 0x465   :  { %1301 = vtanh.f32 %v952_v33 }
 0x471   :  { %v1300_v36 = vpop.eup %1299 }
 0x472   :  { %v1302_v37 = vpop.eup %1301  ;;  %v959_v38 = vmul.f32 %v1300_v36, %v1296_v34 }
 0x473   :  { %v960_v39 = vmul.f32 %v1302_v37, %v1298_v35 }
 0x474   :  { %963 = vst [vmem:[#allocation10 + $0x10] sm:$0xff] %v959_v38 }
 0x475   :  { %964 = vst [vmem:[#allocation10 + $0x18] sm:$0xff] %v960_v39 }
 0x476   :  { %1394 = shalt.err (!%p1391_p10)
}
 0x477   :  { %s1421_s2 = smov 512   ;;  %s1422_s22 = smov 32  }
 0x478   :  { %992 = dma.vmem_to_hbm [thread:$0]  %s987_s20, 2560, %s1588_s8, [#allocation4], %s1421_s2, %s1421_s2, %s1422_s22  }
 0x479   :  { %1409 = dma.done.wait [#allocation4], 2560  }
 0x47a   :  { %1410 = vsyncadd [#allocation4], 4294964736 }
 0x47b   :  { %996 = vsyncpa [#allocation3], 1 }
 0x47c   :  { %997 = vsyncpa [#allocation6], 1 }
 0x47d   :  { %998 = vsyncpa [#allocation9], 1 }
 0x47e   :  { %999 = vsyncpa [#allocation4], 1 }

</bundles_post_ra>
